<compile_context>
chip_gen: v7x
topology: tpu7x:2x2x1
jax: 0.10.0
libtpu: 0.0.40
codegen_flags: <defaults>
</compile_context>

<pallas_src>
import jax
import jax.numpy as jnp
from jax.experimental import pallas as pl
from jax.experimental.pallas import tpu as pltpu

_LANE = 128  # TPU lane width; pad feature dims to multiples of this.


# ------------------------------ small helpers ------------------------------

def _round_up(n, m):
    return ((n + m - 1) // m) * m


def _pad_axis(a, target, axis):
    """Zero-pad `a` along `axis` up to size `target` (no-op if already there)."""
    pad = target - a.shape[axis]
    if pad == 0:
        return a
    widths = [(0, 0)] * a.ndim
    widths[axis] = (0, pad)
    return jnp.pad(a, widths)


# ------------------------------ Pallas kernel -------------------------------

def _make_fused_mlp_kernel(n_hidden, compute_dtype):
    """Build a fused kernel for `n_hidden` (Linear+BN+ReLU) layers + final Linear.

    Ref order: x, [w, scale, shift] * n_hidden, w_last, b_last, o
    All matmuls accumulate in f32 on the MXU; the affine/relu epilogue stays in f32
    (important on v5e, whose VPU has no bf16 path); activations are cast back to
    `compute_dtype` only to feed the next matmul.
    """

    def kernel(*refs):
        x_ref, o_ref = refs[0], refs[-1]
        h = x_ref[...].astype(compute_dtype)
        idx = 1
        for _ in range(n_hidden):
            w_ref, scale_ref, shift_ref = refs[idx], refs[idx + 1], refs[idx + 2]
            idx += 3
            y = jnp.dot(h, w_ref[...], preferred_element_type=jnp.float32)
            y = y * scale_ref[...] + shift_ref[...]          # f32 epilogue (folded BN)
            h = jnp.maximum(y, 0.0).astype(compute_dtype)    # relu
        w_ref, b_ref = refs[idx], refs[idx + 1]
        y = jnp.dot(h, w_ref[...], preferred_element_type=jnp.float32)
        o_ref[...] = (y + b_ref[...]).astype(o_ref.dtype)

    return kernel


# ------------------------ parameter init + forward --------------------------

def init_mlp_params(key, num_features, hidden_channels, out_channels, num_layers):
    """Deterministic init mimicking the module's __init__ shapes.

    lins[0]: (num_features -> hidden), lins[1..L-2]: (hidden -> hidden),
    lins[-1]: (hidden -> out); bns[i] paired with lins[i] for i < L-1.
    Weights stored already transposed: [C_in, C_out].
    """
    dims = [num_features] + [hidden_channels] * (num_layers - 1) + [out_channels]
    params = []
    for li in range(num_layers):
        fan_in, fan_out = dims[li], dims[li + 1]
        key, kw, kb, kg, kbeta, km, kv = jax.random.split(key, 7)
        bound = 1.0 / jnp.sqrt(fan_in)
        w = jax.random.uniform(kw, (fan_in, fan_out), jnp.float32, -bound, bound)
        b = jax.random.uniform(kb, (fan_out,), jnp.float32, -bound, bound)
        layer = {"w": w, "b": b}
        if li < num_layers - 1:  # has a BatchNorm1d after it
            layer["gamma"] = 1.0 + 0.1 * jax.random.normal(kg, (fan_out,), jnp.float32)
            layer["beta"] = 0.1 * jax.random.normal(kbeta, (fan_out,), jnp.float32)
            layer["running_mean"] = 0.05 * jax.random.normal(km, (fan_out,), jnp.float32)
            layer["running_var"] = 1.0 + 0.1 * jax.random.uniform(kv, (fan_out,), jnp.float32)
        params.append(layer)
    return params


def mlp_forward(params, x, *, eps=1e-5, tm=128, compute_dtype=jnp.float32):
    """Fused Pallas forward pass (eval-mode semantics).

    Folds BN into per-layer (scale, shift), zero-pads every feature dim to a
    multiple of 128 and the batch dim to a multiple of `tm`, then runs the whole
    MLP in one pallas_call (weights resident in VMEM across all row tiles).
    Zero-padding is exact: padded weight rows are zero, so padded activation
    columns never contribute; padded output columns/rows are sliced off.
    """
    N, cin = x.shape
    out_channels = params[-1]["w"].shape[1]
    n_hidden = len(params) - 1

    n_pad = _round_up(N, tm)
    cin_pad = _round_up(cin, _LANE)

    # Input: rows -> multiple of tm, features -> lane-dense; cast for the MXU.
    x_p = _pad_axis(_pad_axis(x, n_pad, 0), cin_pad, 1).astype(compute_dtype)

    weight_inputs = []
    weight_specs = []
    prev_pad = cin_pad

    # Hidden layers: fold BN -> (scale, shift), pad to (prev_pad, cout_pad).
    for layer in params[:-1]:
        w = layer["w"]
        cout_pad = _round_up(w.shape[1], _LANE)
        inv_std = 1.0 / jnp.sqrt(layer["running_var"] + eps)
        scale = layer["gamma"] * inv_std
        shift = (layer["b"] - layer["running_mean"]) * scale + layer["beta"]
        w_p = _pad_axis(_pad_axis(w, prev_pad, 0), cout_pad, 1).astype(compute_dtype)
        scale_p = _pad_axis(scale[None, :], cout_pad, 1).astype(jnp.float32)
        shift_p = _pad_axis(shift[None, :], cout_pad, 1).astype(jnp.float32)
        weight_inputs += [w_p, scale_p, shift_p]
        weight_specs += [
            pl.BlockSpec((prev_pad, cout_pad), lambda i: (0, 0)),  # resident in VMEM
            pl.BlockSpec((1, cout_pad), lambda i: (0, 0)),
            pl.BlockSpec((1, cout_pad), lambda i: (0, 0)),
        ]
        prev_pad = cout_pad

    # Final linear layer.
    last = params[-1]
    out_pad = _round_up(out_channels, _LANE)
    w_last = _pad_axis(_pad_axis(last["w"], prev_pad, 0), out_pad, 1).astype(compute_dtype)
    b_last = _pad_axis(last["b"][None, :], out_pad, 1).astype(jnp.float32)
    weight_inputs += [w_last, b_last]
    weight_specs += [
        pl.BlockSpec((prev_pad, out_pad), lambda i: (0, 0)),
        pl.BlockSpec((1, out_pad), lambda i: (0, 0)),
    ]

    grid = (n_pad // tm,)
    kernel = _make_fused_mlp_kernel(n_hidden, compute_dtype)

    out = pl.pallas_call(
        kernel,
        out_shape=jax.ShapeDtypeStruct((n_pad, out_pad), jnp.float32),
        grid=grid,
        in_specs=[pl.BlockSpec((tm, cin_pad), lambda i: (i, 0))] + weight_specs,
        out_specs=pl.BlockSpec((tm, out_pad), lambda i: (i, 0)),
        compiler_params=pltpu.CompilerParams(
            dimension_semantics=("parallel",),  # rows independent -> megacore/2xTC
        ),
    )(x_p, *weight_inputs)

    return out[:N, :out_channels]


def mlp_forward_ref(params, x, *, eps=1e-5):
    """Plain-JAX reference (eval-mode) for correctness checking."""
    for layer in params[:-1]:
        z = x @ layer["w"] + layer["b"]
        z = (z - layer["running_mean"]) / jnp.sqrt(layer["running_var"] + eps)
        z = z * layer["gamma"] + layer["beta"]
        x = jnp.maximum(z, 0.0)
    return x @ params[-1]["w"] + params[-1]["b"]


# ---------------------------------- main ------------------------------------

if __name__ == "__main__":
    # Small shapes consistent with the module's forward: N sampled nodes,
    # num_features -> hidden_channels (x num_layers-1) -> out_channels classes.
    N = 256                # 2 row tiles of 128 -> grid has >= 2 parallel steps
    num_features = 32
    hidden_channels = 64
    out_channels = 16
    num_layers = 3

    key = jax.random.PRNGKey(0)
    key, kx = jax.random.split(key)
    x = jax.random.normal(kx, (N, num_features), jnp.float32)

    params = init_mlp_params(key, num_features, hidden_channels, out_channels, num_layers)

    ref = mlp_forward_ref(params, x)

    # f32 compute path (bit-for-bit-ish vs the reference).
    out_f32 = jax.block_until_ready(mlp_forward(params, x, compute_dtype=jnp.float32))
    assert out_f32.shape == (N, out_channels)
    assert jnp.allclose(out_f32, ref, atol=1e-4, rtol=1e-4), "f32 Pallas output mismatch"

    # bf16 matmul-input path (v6e/v7x fast path: bf16 MXU inputs, f32 accumulate
    # and f32 epilogue) -- checked with a looser tolerance.
    out_bf16 = jax.block_until_ready(mlp_forward(params, x, compute_dtype=jnp.bfloat16))
    assert out_bf16.shape == (N, out_channels)
    assert jnp.allclose(out_bf16, ref, atol=1e-1, rtol=5e-2), "bf16 Pallas output mismatch"

    print("KERNEL_OK")
</pallas_src>

<mosaic_0001>
module attributes {stable_mosaic.version = 11 : i64} {
  func.func @kernel(%arg0: i32, %arg1: memref<128x128xf32, #tpu.memory_space<vmem>>, %arg2: memref<128x128xf32, #tpu.memory_space<vmem>>, %arg3: memref<1x128xf32, #tpu.memory_space<vmem>>, %arg4: memref<1x128xf32, #tpu.memory_space<vmem>>, %arg5: memref<128x128xf32, #tpu.memory_space<vmem>>, %arg6: memref<1x128xf32, #tpu.memory_space<vmem>>, %arg7: memref<1x128xf32, #tpu.memory_space<vmem>>, %arg8: memref<128x128xf32, #tpu.memory_space<vmem>>, %arg9: memref<1x128xf32, #tpu.memory_space<vmem>>, %arg10: memref<128x128xf32, #tpu.memory_space<vmem>>) attributes {dimension_semantics = [#tpu.dimension_semantics<parallel>], iteration_bounds = array<i64: 2>, scalar_prefetch = 0 : i64, scratch_operands = 0 : i64, tpu.core_type = #tpu.core_type<tc>, window_params = [{transform_indices = @transform_0, window_bounds = array<i64: 128, 128>}, {pipeline_mode = #tpu.pipeline_mode<synchronous>, transform_indices = @transform_1, window_bounds = array<i64: 128, 128>}, {pipeline_mode = #tpu.pipeline_mode<synchronous>, transform_indices = @transform_2, window_bounds = array<i64: 1, 128>}, {pipeline_mode = #tpu.pipeline_mode<synchronous>, transform_indices = @transform_3, window_bounds = array<i64: 1, 128>}, {pipeline_mode = #tpu.pipeline_mode<synchronous>, transform_indices = @transform_4, window_bounds = array<i64: 128, 128>}, {pipeline_mode = #tpu.pipeline_mode<synchronous>, transform_indices = @transform_5, window_bounds = array<i64: 1, 128>}, {pipeline_mode = #tpu.pipeline_mode<synchronous>, transform_indices = @transform_6, window_bounds = array<i64: 1, 128>}, {pipeline_mode = #tpu.pipeline_mode<synchronous>, transform_indices = @transform_7, window_bounds = array<i64: 128, 128>}, {pipeline_mode = #tpu.pipeline_mode<synchronous>, transform_indices = @transform_8, window_bounds = array<i64: 1, 128>}, {transform_indices = @transform_9, window_bounds = array<i64: 128, 128>}]} {
    %c0 = arith.constant 0 : index
    %c0_0 = arith.constant 0 : index
    %0 = vector.load %arg1[%c0, %c0_0] : memref<128x128xf32, #tpu.memory_space<vmem>>, vector<128x128xf32>
    %c0_1 = arith.constant 0 : index
    %c0_2 = arith.constant 0 : index
    %1 = vector.load %arg2[%c0_1, %c0_2] : memref<128x128xf32, #tpu.memory_space<vmem>>, vector<128x128xf32>
    %cst = arith.constant dense<0.000000e+00> : vector<128x128xf32>
    %2 = tpu.matmul %0, %1, %cst {dimension_numbers = #tpu.dot_dimension_numbers<[1], [0], [0], [1], [0, 0, 1, 1], [], []>} : vector<128x128xf32>, vector<128x128xf32>, vector<128x128xf32> -> vector<128x128xf32>
    %c0_3 = arith.constant 0 : index
    %c0_4 = arith.constant 0 : index
    %3 = vector.load %arg3[%c0_3, %c0_4] : memref<1x128xf32, #tpu.memory_space<vmem>>, vector<1x128xf32>
    %4 = vector.broadcast %3 : vector<1x128xf32> to vector<128x128xf32>
    %5 = arith.mulf %2, %4 : vector<128x128xf32>
    %c0_5 = arith.constant 0 : index
    %c0_6 = arith.constant 0 : index
    %6 = vector.load %arg4[%c0_5, %c0_6] : memref<1x128xf32, #tpu.memory_space<vmem>>, vector<1x128xf32>
    %7 = vector.broadcast %6 : vector<1x128xf32> to vector<128x128xf32>
    %8 = arith.addf %5, %7 : vector<128x128xf32>
    %cst_7 = arith.constant 0.000000e+00 : f32
    %9 = vector.broadcast %cst_7 : f32 to vector<128x128xf32>
    %10 = arith.maximumf %8, %9 : vector<128x128xf32>
    %c0_8 = arith.constant 0 : index
    %c0_9 = arith.constant 0 : index
    %11 = vector.load %arg5[%c0_8, %c0_9] : memref<128x128xf32, #tpu.memory_space<vmem>>, vector<128x128xf32>
    %cst_10 = arith.constant dense<0.000000e+00> : vector<128x128xf32>
    %12 = tpu.matmul %10, %11, %cst_10 {dimension_numbers = #tpu.dot_dimension_numbers<[1], [0], [0], [1], [0, 0, 1, 1], [], []>} : vector<128x128xf32>, vector<128x128xf32>, vector<128x128xf32> -> vector<128x128xf32>
    %c0_11 = arith.constant 0 : index
    %c0_12 = arith.constant 0 : index
    %13 = vector.load %arg6[%c0_11, %c0_12] : memref<1x128xf32, #tpu.memory_space<vmem>>, vector<1x128xf32>
    %14 = vector.broadcast %13 : vector<1x128xf32> to vector<128x128xf32>
    %15 = arith.mulf %12, %14 : vector<128x128xf32>
    %c0_13 = arith.constant 0 : index
    %c0_14 = arith.constant 0 : index
    %16 = vector.load %arg7[%c0_13, %c0_14] : memref<1x128xf32, #tpu.memory_space<vmem>>, vector<1x128xf32>
    %17 = vector.broadcast %16 : vector<1x128xf32> to vector<128x128xf32>
    %18 = arith.addf %15, %17 : vector<128x128xf32>
    %cst_15 = arith.constant 0.000000e+00 : f32
    %19 = vector.broadcast %cst_15 : f32 to vector<128x128xf32>
    %20 = arith.maximumf %18, %19 : vector<128x128xf32>
    %c0_16 = arith.constant 0 : index
    %c0_17 = arith.constant 0 : index
    %21 = vector.load %arg8[%c0_16, %c0_17] : memref<128x128xf32, #tpu.memory_space<vmem>>, vector<128x128xf32>
    %cst_18 = arith.constant dense<0.000000e+00> : vector<128x128xf32>
    %22 = tpu.matmul %20, %21, %cst_18 {dimension_numbers = #tpu.dot_dimension_numbers<[1], [0], [0], [1], [0, 0, 1, 1], [], []>} : vector<128x128xf32>, vector<128x128xf32>, vector<128x128xf32> -> vector<128x128xf32>
    %c0_19 = arith.constant 0 : index
    %c0_20 = arith.constant 0 : index
    %23 = vector.load %arg9[%c0_19, %c0_20] : memref<1x128xf32, #tpu.memory_space<vmem>>, vector<1x128xf32>
    %24 = vector.broadcast %23 : vector<1x128xf32> to vector<128x128xf32>
    %25 = arith.addf %22, %24 : vector<128x128xf32>
    %c0_21 = arith.constant 0 : index
    %c0_22 = arith.constant 0 : index
    %26 = vector.load %arg10[%c0_21, %c0_22] : memref<128x128xf32, #tpu.memory_space<vmem>>, vector<128x128xf32>
    tpu.vector_store %arg10[%c0_21, %c0_22], %25 {strides = array<i32>} : memref<128x128xf32, #tpu.memory_space<vmem>>, vector<128x128xf32>,
    return
  }
  func.func @transform_0(%arg0: i32) -> (i32, i32) {
    %c0_i32 = arith.constant 0 : i32
    %c0_i32_0 = arith.constant 0 : i32
    return %arg0, %c0_i32 : i32, i32
  }
  func.func @transform_1(%arg0: i32) -> (i32, i32) {
    %c0_i32 = arith.constant 0 : i32
    %c0_i32_0 = arith.constant 0 : i32
    %c0_i32_1 = arith.constant 0 : i32
    return %c0_i32, %c0_i32_0 : i32, i32
  }
  func.func @transform_2(%arg0: i32) -> (i32, i32) {
    %c0_i32 = arith.constant 0 : i32
    %c0_i32_0 = arith.constant 0 : i32
    %c0_i32_1 = arith.constant 0 : i32
    return %c0_i32, %c0_i32_0 : i32, i32
  }
  func.func @transform_3(%arg0: i32) -> (i32, i32) {
    %c0_i32 = arith.constant 0 : i32
    %c0_i32_0 = arith.constant 0 : i32
    %c0_i32_1 = arith.constant 0 : i32
    return %c0_i32, %c0_i32_0 : i32, i32
  }
  func.func @transform_4(%arg0: i32) -> (i32, i32) {
    %c0_i32 = arith.constant 0 : i32
    %c0_i32_0 = arith.constant 0 : i32
    %c0_i32_1 = arith.constant 0 : i32
    return %c0_i32, %c0_i32_0 : i32, i32
  }
  func.func @transform_5(%arg0: i32) -> (i32, i32) {
    %c0_i32 = arith.constant 0 : i32
    %c0_i32_0 = arith.constant 0 : i32
    %c0_i32_1 = arith.constant 0 : i32
    return %c0_i32, %c0_i32_0 : i32, i32
  }
  func.func @transform_6(%arg0: i32) -> (i32, i32) {
    %c0_i32 = arith.constant 0 : i32
    %c0_i32_0 = arith.constant 0 : i32
    %c0_i32_1 = arith.constant 0 : i32
    return %c0_i32, %c0_i32_0 : i32, i32
  }
  func.func @transform_7(%arg0: i32) -> (i32, i32) {
    %c0_i32 = arith.constant 0 : i32
    %c0_i32_0 = arith.constant 0 : i32
    %c0_i32_1 = arith.constant 0 : i32
    return %c0_i32, %c0_i32_0 : i32, i32
  }
  func.func @transform_8(%arg0: i32) -> (i32, i32) {
    %c0_i32 = arith.constant 0 : i32
    %c0_i32_0 = arith.constant 0 : i32
    %c0_i32_1 = arith.constant 0 : i32
    return %c0_i32, %c0_i32_0 : i32, i32
  }
  func.func @transform_9(%arg0: i32) -> (i32, i32) {
    %c0_i32 = arith.constant 0 : i32
    %c0_i32_0 = arith.constant 0 : i32
    return %arg0, %c0_i32 : i32, i32
  }
}

</mosaic_0001>

<bundles_post_ra>
// kernel: tpu_custom_call.1
= control target key start
LH: loop header
LB: loop body
LE: loop exit
PB: predicated region body
PF: predicated region fallthrough
CT: control target
= control target key end

     0   :  { %s2315_s0 = inlined_call_operand.hbm [shape: f32[256,128], index: 0, kind: input, shape index: {}]   ;;  %s2316_s1 = inlined_call_operand.hbm [shape: f32[128,128], index: 1, kind: input, shape index: {}]   ;;  %s2317_s2 = inlined_call_operand.vmem [shape: f32[1,128], index: 2, kind: input, shape index: {}]   ;;  %s2318_s3 = inlined_call_operand.vmem [shape: f32[1,128], index: 3, kind: input, shape index: {}]   ;;  %s2319_s4 = inlined_call_operand.hbm [shape: f32[128,128], index: 4, kind: input, shape index: {}]   ;;  %s2320_s5 = inlined_call_operand.vmem [shape: f32[1,128], index: 5, kind: input, shape index: {}]   ;;  %s2321_s6 = inlined_call_operand.vmem [shape: f32[1,128], index: 6, kind: input, shape index: {}]   ;;  %s2322_s7 = inlined_call_operand.hbm [shape: f32[128,128], index: 7, kind: input, shape index: {}]   ;;  %s2323_s8 = inlined_call_operand.vmem [shape: f32[1,128], index: 8, kind: input, shape index: {}]   ;;  %s2324_s9 = inlined_call_operand.hbm [shape: f32[256,128], index: 9, kind: output, shape index: {}]  }
   0x1   :  { %2331 = sst [smem:[#allocation17_spill]] %s2324_s9 }
   0x2   :  { %14 = vsyncpa [#allocation3], 0 }
   0x3   :  { %16 = vsyncpa [#allocation3 + $0x1], 0 }
   0x4   :  { %17 = vsyncpa [#allocation6], 0 }
   0x5   :  { %18 = vsyncpa [#allocation9], 0 }
   0x6   :  { %19 = vsyncpa [#allocation4], 0 }
   0x7   :  { %21 = vsyncpa [#allocation4 + $0x1], 0  ;;  %s1892_s30 = smov 0   ;;  %s1894_s10 = smov 0  }
   0x8   :  { %s1896_s11 = smov 0   ;;  %s1898_s12 = smov 0  }
   0x9 LB: > { %2332 = sst [smem:[#allocation15_spill]] %s1819_s30  ;;  %s1913_s13 = sadd.s32 4294967295, %s1831_s12   ;;  %s1831_s12 = sphi %s1898_s12, %s2356_s12   ;;  %s1827_s11 = sphi %s1896_s11, %s2355_s11   ;;  %s1823_s10 = sphi %s1894_s10, %s2354_s10   ;;  %s1819_s30 = sphi %s1892_s30, %s2353_s30  }
   0xa   : > { %s1159_s14 = sadd.s32 4294967294, %s1831_s12   ;;  %p47_p0 = scmp.ne.s32.totalorder %s1823_s10, %s1819_s30 }
   0xb   : > { %p2325_p1 = scmp.eq.s32.totalorder %s1913_s13, 0  ;;  %p245_p3 = scmp.eq.s32.totalorder %s1159_s14, 1 }
   0xc   : > { %p1160_p5 = scmp.ge.s32.totalorder %s1831_s12, 1  ;;  %p252_p7 = scmp.lt.s32.totalorder %s1831_s12, 3 }
   0xd   : > { %p1922_p4 = por %p2325_p1, %p47_p0  ;;  %p1927_p6 = por %p245_p3, %p47_p0 }
   0xe   : > { %p1932_p8 = pnand %p1160_p5, %p252_p7  ;;  %s1833_s18 = smov [#allocation5]  }
   0xf   : > { %s2333_s15 = scalar_select %p1922_p4, 1, 0 }
  0x10   : > { %s2334_s16 = scalar_select %p1927_p6, 1, 0 }
  0x11   : > { %s2336_s17 = scalar_select %p1932_p8, 1, 0 }
  0x12   : > { %2335 = sst [smem:[#allocation16_spill]] %s2334_s16  ;;  %s264_s19 = sshll.u32 %s1833_s18, 4  ;;  %s1936_s19 = int_to_ptr.vmem [resolvable:$true] %s264_s19 }
  0x13   : > { %p1578_p9 = pneg %p1932_p8  ;;  %s1834_s21 = smov [#allocation7]  }
  0x14   : > { %s283_s22 = sshll.u32 %s1834_s21, 4  ;;  %s1835_s23 = smov [#allocation8]   ;;  %s1947_s22 = int_to_ptr.vmem [resolvable:$true] %s283_s22 }
  0x15   : > { %p1943_p11 = pnand %p1578_p9, %p2325_p1  ;;  %s1949_s24 = sshll.u32 %s1835_s23, 4  ;;  %s303_s24 = int_to_ptr.vmem [resolvable:$true] %s1949_s24 }
  0x16   : > { %s1643_s27 = scalar_lea.hbm %s2316_s1, 2048 }
  0x17   : > { %p1644_p12 = scmp.ne.s32.totalorder %s2316_s1, %s1643_s27  ;;  %p1959_p13 = pneg %p1943_p11 }
  0x18   : > { %p1650_p5 = scmp.lt.u32.totalorder %s1643_s27, %s2316_s1 }
  0x19   : > { %p1646_p0 = pnand %p1959_p13, %p1644_p12 }
  0x1b   : > { %p1647_p3 = pneg %p1646_p0 }
  0x1d   : > { %p1652_p7 = pnand %p1650_p5, %p1647_p3 }
  0x1f   : > { %1655 = shalt.err (!%p1652_p7)
}
  0x20   : > { %s1656_s23 = scalar_lea.vmem %s1936_s19, 2048  ;;  %p1664_p2 = scmp.lt.s32.totalorder %s1936_s19, %s1936_s19 }
  0x21   : > { %p1657_p9 = scmp.ne.s32.totalorder %s1936_s19, %s1656_s23  ;;  %p1665_p6 = scmp.lt.s32.totalorder %s1656_s23, %s1656_s23 }
  0x23   : > { %p1659_p10 = pnand %p1657_p9, %p1959_p13  ;;  %p1666_p12 = por %p1665_p6, %p1664_p2 }
  0x25   : > { %p1660_p1 = pneg %p1659_p10 }
  0x27   : > { %p1667_p0 = pnand %p1666_p12, %p1660_p1 }
  0x29   : > { %1670 = shalt.err (!%p1667_p0)
}
  0x2a   : > { %s1836_s25 = smov 128   ;;  %s1837_s26 = smov 8  }
  0x2b   : > { %1581 = dma.hbm_to_vmem [thread:$0]  (!%p1943_p11), %s2316_s1, 2048, %s1936_s19, [#allocation6], %s1836_s25, %s1836_s25, %s1837_s26  }
  0x2c   : > { %s1671_s21 = scalar_lea.hbm %s2319_s4, 2048 }
  0x2d   : > { %p1672_p1 = scmp.ne.s32.totalorder %s2319_s4, %s1671_s21  ;;  %p1678_p10 = scmp.lt.u32.totalorder %s1671_s21, %s2319_s4 }
  0x2f   : > { %p1674_p2 = pnand %p1672_p1, %p1959_p13 }
  0x31   : > { %p1675_p6 = pneg %p1674_p2 }
  0x33   : > { %p1680_p3 = pnand %p1678_p10, %p1675_p6 }
  0x35   : > { %1683 = shalt.err (!%p1680_p3)
}
  0x36   : > { %s1684_s19 = scalar_lea.vmem %s1947_s22, 2048  ;;  %p1692_p12 = scmp.lt.s32.totalorder %s1947_s22, %s1947_s22 }
  0x37   : > { %p1685_p5 = scmp.ne.s32.totalorder %s1947_s22, %s1684_s19  ;;  %p1693_p0 = scmp.lt.s32.totalorder %s1684_s19, %s1684_s19 }
  0x39   : > { %p1687_p7 = pnand %p1685_p5, %p1959_p13  ;;  %p1694_p1 = por %p1693_p0, %p1692_p12 }
  0x3b   : > { %p1688_p9 = pneg %p1687_p7 }
  0x3d   : > { %p1695_p2 = pnand %p1694_p1, %p1688_p9 }
  0x3f   : > { %1698 = shalt.err (!%p1695_p2)
}
  0x40   : > { %1584 = dma.hbm_to_vmem [thread:$0]  (!%p1943_p11), %s2319_s4, 2048, %s1947_s22, [#allocation6], %s1836_s25, %s1836_s25, %s1837_s26  }
  0x41   : > { %s1699_s28 = scalar_lea.hbm %s2322_s7, 2048 }
  0x42   : > { %p1700_p6 = scmp.ne.s32.totalorder %s2322_s7, %s1699_s28  ;;  %p1706_p5 = scmp.lt.u32.totalorder %s1699_s28, %s2322_s7 }
  0x44   : > { %p1702_p10 = pnand %p1700_p6, %p1959_p13 }
  0x46   : > { %p1703_p3 = pneg %p1702_p10 }
  0x48   : > { %p1708_p7 = pnand %p1706_p5, %p1703_p3 }
  0x4a   : > { %1711 = shalt.err (!%p1708_p7)
}
  0x4b   : > { %s1712_s19 = scalar_lea.vmem %s303_s24, 2048  ;;  %p1720_p1 = scmp.lt.s32.totalorder %s303_s24, %s303_s24 }
  0x4c   : > { %p1713_p9 = scmp.ne.s32.totalorder %s303_s24, %s1712_s19  ;;  %p1721_p2 = scmp.lt.s32.totalorder %s1712_s19, %s1712_s19 }
  0x4e   : > { %p1715_p12 = pnand %p1713_p9, %p1959_p13  ;;  %p1722_p4 = por %p1721_p2, %p1720_p1 }
  0x50   : > { %p1716_p0 = pneg %p1715_p12 }
  0x52   : > { %p1723_p8 = pnand %p1722_p4, %p1716_p0 }
  0x54   : > { %1726 = shalt.err (!%p1723_p8)
}
  0x55   : > { %1587 = dma.hbm_to_vmem [thread:$0]  (!%p1943_p11), %s2322_s7, 2048, %s303_s24, [#allocation9], %s1836_s25, %s1836_s25, %s1837_s26  }
  0x56   : > { %s2032_s14 = sadd.s32 1, %s1831_s12   ;;  %s34_s30 = sadd.s32 1, %s1827_s11 }
  0x57   : > { %s31_s20 = ssub.s32 %s1831_s12, %s2032_s14  ;;  %p41_p8 = scmp.ne.s32.totalorder %s1827_s11, %s1823_s10 }
  0x58   : > { %p32_p4 = scmp.eq.s32.totalorder %s31_s20, 0  ;;  %p42_p13 = scmp.eq.s32.totalorder %s1831_s12, 0 }
  0x59   : > { %p1599_p6 = scmp.lt.s32.totalorder %s1831_s12, 2  ;;  %p2339_p3 = scmp.eq.s32.totalorder %s1913_s13, 1 }
  0x5a   : > { %s2042_s16 = scalar_select %p32_p4, %s1827_s11, %s34_s30  }
  0x5b   : > { %p43_p10 = por %p42_p13, %p41_p8  ;;  %p2046_p5 = por %p2339_p3, %p41_p8 }
  0x5c   : > { %s319_s28 = sand.u32 1, %s1827_s11   ;;  %s1184_s29 = sshll.u32 %s1831_s12, 11 }
  0x5d   : > { %s1165_s24 = sshll.u32 %s319_s28, 7  ;;  %s2055_s23 = scalar_lea.hbm %s2315_s0, %s1184_s29 }
  0x5e   : > { %s323_s19 = scalar_lea.vmem [#allocation2], %s1165_s24  ;;  %p2057_p11 = pnand %p1599_p6, %p43_p10 }
  0x5f   : > { %s330_s22 = sshll.u32 %s323_s19, 4  ;;  %s2063_s20 = scalar_lea.sflag [#allocation3], %s319_s28  ;;  %s2061_s22 = int_to_ptr.vmem [resolvable:$true] %s330_s22 }
  0x60   : > { %s1727_s30 = scalar_lea.hbm %s2055_s23, 2048  ;;  %p1729_p9 = pneg %p2057_p11 }
  0x61   : > { %p1728_p7 = scmp.ne.s32.totalorder %s2055_s23, %s1727_s30  ;;  %s1732_s18 = scalar_lea.hbm %s2315_s0, 4096 }
  0x62   : > { %p1733_p1 = scmp.lt.u32.totalorder %s2055_s23, %s2315_s0  ;;  %p1734_p2 = scmp.lt.u32.totalorder %s1732_s18, %s1727_s30 }
  0x63   : > { %p1730_p12 = pnand %p1729_p9, %p1728_p7  ;;  %p1736_p8 = scmp.lt.u32.totalorder %s1727_s30, %s2055_s23 }
  0x64   : > { %p1735_p4 = por %p1734_p2, %p1733_p1 }
  0x65   : > { %p1731_p0 = pneg %p1730_p12 }
  0x66   : > { %p1737_p13 = por %p1736_p8, %p1735_p4 }
  0x68   : > { %p1738_p6 = pnand %p1737_p13, %p1731_p0 }
  0x6a   : > { %1741 = shalt.err (!%p1738_p6)
}
  0x6b   : > { %s1742_s28 = scalar_lea.vmem %s2061_s22, 2048  ;;  %s1838_s29 = smov [#allocation2]  }
  0x6c   : > { %p1743_p10 = scmp.ne.s32.totalorder %s2061_s22, %s1742_s28  ;;  %s1747_s24 = sshll.u32 %s1838_s29, 4  ;;  %s1748_s24 = int_to_ptr.vmem [resolvable:$false] %s1747_s24 }
  0x6d   : > { %s1749_s21 = scalar_lea.vmem %s1748_s24, 4096  ;;  %p1750_p12 = scmp.lt.s32.totalorder %s2061_s22, %s1748_s24 }
  0x6e   : > { %p1745_p3 = pnand %p1743_p10, %p1729_p9  ;;  %p1751_p1 = scmp.lt.s32.totalorder %s1749_s21, %s1742_s28 }
  0x70   : > { %p1746_p7 = pneg %p1745_p3  ;;  %p1752_p2 = por %p1751_p1, %p1750_p12 }
  0x72   : > { %p1753_p4 = pnand %p1752_p2, %p1746_p7 }
  0x74   : > { %1756 = shalt.err (!%p1753_p4)
}
  0x75   : > { %1591 = dma.hbm_to_vmem [thread:$0]  (!%p2057_p11), %s2055_s23, 2048, %s2061_s22, %s2063_s20, %s1836_s25, %s1836_s25, %s1837_s26  }
  0x76   : > { %p2342_p9 = scmp.ne.s32.totalorder %s2336_s17, 0 }
  0x77   : > { %s2097_s30 = sand.u32 (!%p2342_p9), 1, %s1823_s10   ;;  %p2343_p0 = scmp.ne.s32.totalorder (!%p2342_p9), %s2333_s15, 0 }
  0x78   : > { %342 = sbr.rel (%p2342_p9) target bundleno = 868 (0x364), region = 56  ;;  %s1169_s18 = sshll.u32 (!%p2342_p9), %s2097_s30, 7 }
  0x79   : > { %s345_s19 = scalar_lea.sflag (!%p2342_p9), [#allocation3], %s2097_s30  ;;  %s2103_s9 = scalar_lea.vmem (!%p2342_p9), [#allocation2], %s1169_s18 }
  0x7f   : > { %1802 = dma.done.wait (%p2343_p0), %s345_s19, 2048  }
  0x80   : > { %1804 = vsyncadd (%p2343_p0), %s345_s19, 4294965248  ;;  %p2344_p11 = scmp.eq.s32.totalorder %s1913_s13, 0 }
  0x82   : > { %1806 = dma.done.wait (%p2344_p11), [#allocation6], 4096   ;;  %p2345_p8 = pmov %p2344_p11 }
  0x84   : > { %1808 = vsyncadd (%p2345_p8), [#allocation6], 4294963200  ;;  %p2346_p13 = pmov %p2345_p8 }
  0x85   : > { %p2347_p6 = pmov %p2345_p8 }
  0x86   : > { %1810 = dma.done.wait (%p2346_p13), [#allocation9], 2048  }
  0x87   : > { %1812 = vsyncadd (%p2347_p6), [#allocation9], 4294965248  ;;  %v413_v0 = vld [vmem:[#allocation5] sm:$0xff]  ;;  %v414_v1 = vld [vmem:[#allocation5 + $0x8] sm:$0xff]  ;;  %s2246_s21 = scalar_lea.vmem [#allocation10], %s1169_s18  ;;  %s1185_s18 = sshll.u32 %s1913_s13, 11 }
  0x88   : > { %v415_v2 = vld [vmem:[#allocation5 + $0x10] sm:$0xff]  ;;  %v1450_v3 = vpack.c.bf16 %v414_v1, %v413_v0  ;;  %v416_v4 = vld [vmem:[#allocation5 + $0x18] sm:$0xff]  ;;  %v417_v6 = vld [vmem:[#allocation5 + $0x20] sm:$0xff]  ;;  %s1057_s19 = sshll.u32 %s2246_s21, 4  ;;  %s2348_s17 = sld [smem:[#allocation17_spill]]  ;;  %s2269_s19 = int_to_ptr.vmem [resolvable:$true] %s1057_s19 }
  0x89   : > { %v1454_v5 = vpack.c.bf16 %v416_v4, %v415_v2  ;;  %v418_v7 = vld [vmem:[#allocation5 + $0x28] sm:$0xff]  ;;  %v397_v9 = vld [vmem:[%s2103_s9] sm:$0xff]  ;;  %v419_v10 = vld [vmem:[#allocation5 + $0x30] sm:$0xff]  ;;  %s1044_s13 = scalar_lea.sflag [#allocation4], %s2097_s30  ;;  %s1757_s26 = scalar_lea.vmem %s2269_s19, 2048 }
  0x8a   : > { %1451 = vmatprep.subr.bf16.mxu0 %v1450_v3  ;;  %v1458_v8 = vpack.c.bf16 %v418_v7, %v417_v6  ;;  %v420_v11 = vld [vmem:[#allocation5 + $0x38] sm:$0xff]  ;;  %1314 = vmatprep.mubr.f32.mxu0 %v397_v9  ;;  %v421_v13 = vld [vmem:[#allocation5 + $0x40] sm:$0xff]  ;;  %v422_v14 = vld [vmem:[#allocation5 + $0x48] sm:$0xff]  ;;  %p1758_p10 = scmp.ne.s32.totalorder %s2269_s19, %s1757_s26  ;;  %s1839_s23 = smov [#allocation10]  }
  0x8b   : > { %1453 = vmatpush3.bf16.msra.mxu0 %v1450_v3  ;;  %v1462_v12 = vpack.c.bf16 %v420_v11, %v419_v10  ;;  %v636_v15 = vld [vmem:[#allocation7] sm:$0xff]  ;;  %v637_v16 = vld [vmem:[#allocation7 + $0x8] sm:$0xff]  ;;  %v638_v17 = vld [vmem:[#allocation7 + $0x10] sm:$0xff]  ;;  %v1466_v21 = vpack.c.bf16 %v422_v14, %v421_v13  ;;  %s1761_s22 = sshll.u32 %s1839_s23, 4  ;;  %s1762_s22 = int_to_ptr.vmem [resolvable:$false] %s1761_s22 }
  0x8c   : > { %1455 = vmatprep.subr.bf16.mxu0 %v1454_v5  ;;  %v639_v18 = vld [vmem:[#allocation7 + $0x18] sm:$0xff]  ;;  %v1482_v19 = vpack.c.bf16 %v637_v16, %v636_v15  ;;  %v640_v22 = vld [vmem:[#allocation7 + $0x20] sm:$0xff]  ;;  %v641_v23 = vld [vmem:[#allocation7 + $0x28] sm:$0xff]  ;;  %p1759_p3 = pnand %p1758_p10, %p2046_p5  ;;  %s1763_s20 = scalar_lea.vmem %s1762_s22, 4096 }
  0x8d   : > { %v1486_v20 = vpack.c.bf16 %v639_v18, %v638_v17  ;;  %v423_v24 = vld [vmem:[#allocation5 + $0x50] sm:$0xff]  ;;  %v424_v25 = vld [vmem:[#allocation5 + $0x58] sm:$0xff]  ;;  %v1490_v26 = vpack.c.bf16 %v641_v23, %v640_v22  ;;  %v425_v30 = vld [vmem:[#allocation5 + $0x60] sm:$0xff]  ;;  %p1764_p12 = scmp.lt.s32.totalorder %s2269_s19, %s1762_s22  ;;  %p1765_p1 = scmp.lt.s32.totalorder %s1763_s20, %s1757_s26 }
  0x8e   : > { %1483 = vmatprep.subr.bf16.mxu1 %v1482_v19  ;;  %v1470_v27 = vpack.c.bf16 %v424_v25, %v423_v24  ;;  %v642_v28 = vld [vmem:[#allocation7 + $0x30] sm:$0xff]  ;;  %v643_v29 = vld [vmem:[#allocation7 + $0x38] sm:$0xff]  ;;  %v426_v31 = vld [vmem:[#allocation5 + $0x68] sm:$0xff]  ;;  %s2267_s25 = scalar_lea.hbm %s2348_s17, %s1185_s18  ;;  %p1760_p7 = pneg %p1759_p3 }
  0x8f   : > { %1457 = vmatpush3.bf16.msra.mxu0 %v1454_v5  ;;  %1485 = vmatpush3.bf16.msra.mxu1 %v1482_v19  ;;  %v1494_v32 = vpack.c.bf16 %v643_v29, %v642_v28  ;;  %v1474_v33 = vpack.c.bf16 %v426_v31, %v425_v30  ;;  %v644_v34 = vld [vmem:[#allocation7 + $0x40] sm:$0xff]  ;;  %v645_v35 = vld [vmem:[#allocation7 + $0x48] sm:$0xff]  ;;  %v427_v36 = vld [vmem:[#allocation5 + $0x70] sm:$0xff]  ;;  %p1766_p2 = por %p1765_p1, %p1764_p12 }
  0x90   : > { %1459 = vmatprep.subr.bf16.mxu0 %v1458_v8  ;;  %1487 = vmatprep.subr.bf16.mxu1 %v1486_v20  ;;  %v428_v37 = vld [vmem:[#allocation5 + $0x78] sm:$0xff]  ;;  %v1498_v38 = vpack.c.bf16 %v645_v35, %v644_v34  ;;  %v646_v40 = vld [vmem:[#allocation7 + $0x50] sm:$0xff]  ;;  %v398_v43 = vld [vmem:[%s2103_s9 + $0x8] sm:$0xff] }
  0x91   : > { %v1478_v39 = vpack.c.bf16 %v428_v37, %v427_v36  ;;  %v647_v41 = vld [vmem:[#allocation7 + $0x58] sm:$0xff]  ;;  %v399_v44 = vld [vmem:[%s2103_s9 + $0x10] sm:$0xff]  ;;  %v401_v46 = vld [vmem:[%s2103_s9 + $0x20] sm:$0xff]  ;;  %p1767_p4 = pnand %p1766_p2, %p1760_p7 }
  0x92   : > { %v1502_v42 = vpack.c.bf16 %v647_v41, %v646_v40  ;;  %v400_v45 = vld [vmem:[%s2103_s9 + $0x18] sm:$0xff]  ;;  %v402_v47 = vld [vmem:[%s2103_s9 + $0x28] sm:$0xff]  ;;  %v403_v48 = vld [vmem:[%s2103_s9 + $0x30] sm:$0xff] }
  0x93   : > { %1461 = vmatpush3.bf16.msra.mxu0 %v1458_v8  ;;  %1489 = vmatpush3.bf16.msra.mxu1 %v1486_v20  ;;  %v404_v49 = vld [vmem:[%s2103_s9 + $0x38] sm:$0xff]  ;;  %v405_v50 = vld [vmem:[%s2103_s9 + $0x40] sm:$0xff]  ;;  %v406_v51 = vld [vmem:[%s2103_s9 + $0x48] sm:$0xff] }
  0x94   : > { %1463 = vmatprep.subr.bf16.mxu0 %v1462_v12  ;;  %1491 = vmatprep.subr.bf16.mxu1 %v1490_v26  ;;  %v407_v52 = vld [vmem:[%s2103_s9 + $0x50] sm:$0xff]  ;;  %v408_v53 = vld [vmem:[%s2103_s9 + $0x58] sm:$0xff]  ;;  %v409_v54 = vld [vmem:[%s2103_s9 + $0x60] sm:$0xff] }
  0x95   : > { %v410_v55 = vld [vmem:[%s2103_s9 + $0x68] sm:$0xff]  ;;  %v411_v56 = vld [vmem:[%s2103_s9 + $0x70] sm:$0xff]  ;;  %v412_v57 = vld [vmem:[%s2103_s9 + $0x78] sm:$0xff] }
  0x96   : > { %v648_v58 = vld [vmem:[#allocation7 + $0x60] sm:$0xff]  ;;  %v649_v59 = vld [vmem:[#allocation7 + $0x68] sm:$0xff]  ;;  %v650_v61 = vld [vmem:[#allocation7 + $0x70] sm:$0xff] }
  0x97   : > { %1465 = vmatpush3.bf16.msra.mxu0 %v1462_v12  ;;  %1493 = vmatpush3.bf16.msra.mxu1 %v1490_v26  ;;  %v1506_v60 = vpack.c.bf16 %v649_v59, %v648_v58  ;;  %v651_v62 = vld [vmem:[#allocation7 + $0x78] sm:$0xff]  ;;  %v859_v0 = vld [vmem:[#allocation8] sm:$0xff]  ;;  %v860_v1 = vld [vmem:[#allocation8 + $0x8] sm:$0xff] }
  0x98   : > { %1467 = vmatprep.subr.bf16.mxu0 %v1466_v21  ;;  %1495 = vmatprep.subr.bf16.mxu1 %v1494_v32  ;;  %v1510_v63 = vpack.c.bf16 %v651_v62, %v650_v61  ;;  %v861_v2 = vld [vmem:[#allocation8 + $0x10] sm:$0xff]  ;;  %v1514_v3 = vpack.c.bf16 %v860_v1, %v859_v0  ;;  %v862_v4 = vld [vmem:[#allocation8 + $0x18] sm:$0xff]  ;;  %v863_v6 = vld [vmem:[#allocation8 + $0x20] sm:$0xff] }
  0x99   : > { %v1518_v5 = vpack.c.bf16 %v862_v4, %v861_v2  ;;  %v864_v7 = vld [vmem:[#allocation8 + $0x28] sm:$0xff]  ;;  %v865_v9 = vld [vmem:[#allocation8 + $0x30] sm:$0xff]  ;;  %v866_v10 = vld [vmem:[#allocation8 + $0x38] sm:$0xff] }
  0x9a   : > { %v2133_v8 = vpack.c.bf16 %v864_v7, %v863_v6  ;;  %v2136_v11 = vpack.c.bf16 %v866_v10, %v865_v9  ;;  %v867_v12 = vld [vmem:[#allocation8 + $0x40] sm:$0xff]  ;;  %v868_v13 = vld [vmem:[#allocation8 + $0x48] sm:$0xff]  ;;  %v869_v15 = vld [vmem:[#allocation8 + $0x50] sm:$0xff] }
  0x9b   : > { %1469 = vmatpush3.bf16.msra.mxu0 %v1466_v21  ;;  %1497 = vmatpush3.bf16.msra.mxu1 %v1494_v32  ;;  %v2140_v14 = vpack.c.bf16 %v868_v13, %v867_v12  ;;  %v870_v16 = vld [vmem:[#allocation8 + $0x58] sm:$0xff]  ;;  %v2152_v18 = vld [vmem:[%s2317_s2] ss:$0 sm:$0xff] }
  0x9c   : > { %1471 = vmatprep.subr.bf16.mxu0 %v1470_v27  ;;  %1499 = vmatprep.subr.bf16.mxu1 %v1498_v38  ;;  %v2144_v17 = vpack.c.bf16 %v870_v16, %v869_v15  ;;  %v2157_v20 = vld [vmem:[%s2318_s3] ss:$0 sm:$0xff] }
  0x9f   : > { %1473 = vmatpush3.bf16.msra.mxu0 %v1470_v27  ;;  %1501 = vmatpush3.bf16.msra.mxu1 %v1498_v38 }
  0xa0   : > { %1475 = vmatprep.subr.bf16.mxu0 %v1474_v33  ;;  %1503 = vmatprep.subr.bf16.mxu1 %v1502_v42 }
  0xa3   : > { %1477 = vmatpush3.bf16.msra.mxu0 %v1474_v33  ;;  %1505 = vmatpush3.bf16.msra.mxu1 %v1502_v42 }
  0xa4   : > { %1479 = vmatprep.subr.bf16.mxu0 %v1478_v39  ;;  %1507 = vmatprep.subr.bf16.mxu1 %v1506_v60 }
  0xa7   : > { %1481 = vmatpush3.bf16.msra.mxu0 %v1478_v39  ;;  %1509 = vmatpush3.bf16.msra.mxu1 %v1506_v60 }
  0xa8   : > { %1511 = vmatprep.subr.bf16.mxu1 %v1510_v63  ;;  %1515 = vmatprep.subr.bf16.mxu0 %v1514_v3 }
  0xaa   : > { %1315 = vmatmul.mubr.f32.vlgmr.msra.gmra.mrb[0].mxu0 %v398_v43 }
  0xab   : > { %1317 = vmatprep.mubr.f32.mxu0 %v399_v44  ;;  %1513 = vmatpush3.bf16.msra.mxu1 %v1510_v63 }
  0xac   : > { %1546 = vmatprep.subr.bf16.mxu1 %v1514_v3  ;;  %1517 = vmatpush3.bf16.msra.mxu0 %v1514_v3 }
  0xad   : > { %1519 = vmatprep.subr.bf16.mxu0 %v1518_v5 }
  0xae   : > { %1318 = vmatmul.mubr.f32.gmra.mrb[2].mxu0 %v400_v45 }
  0xaf   : > { %1320 = vmatprep.mubr.f32.mxu0 %v401_v46 }
  0xb0   : > { %1521 = vmatpush3.bf16.msra.mxu0 %v1518_v5 }
  0xb1   : > { %1523 = vmatprep.subr.bf16.mxu0 %v2133_v8 }
  0xb2   : > { %1321 = vmatmul.mubr.f32.gmra.mrb[4].mxu0 %v402_v47 }
  0xb3   : > { %1323 = vmatprep.mubr.f32.mxu0 %v403_v48 }
  0xb4   : > { %1525 = vmatpush3.bf16.msra.mxu0 %v2133_v8 }
  0xb5   : > { %1527 = vmatprep.subr.bf16.mxu0 %v2136_v11 }
  0xb6   : > { %1324 = vmatmul.mubr.f32.gmra.mrb[6].mxu0 %v404_v49 }
  0xb7   : > { %1326 = vmatprep.mubr.f32.mxu0 %v405_v50 }
  0xb8   : > { %1529 = vmatpush3.bf16.msra.mxu0 %v2136_v11 }
  0xb9   : > { %1531 = vmatprep.subr.bf16.mxu0 %v2140_v14 }
  0xba   : > { %1327 = vmatmul.mubr.f32.gmra.mrb[8].mxu0 %v406_v51 }
  0xbb   : > { %1329 = vmatprep.mubr.f32.mxu0 %v407_v52 }
  0xbc   : > { %1533 = vmatpush3.bf16.msra.mxu0 %v2140_v14 }
  0xbd   : > { %1535 = vmatprep.subr.bf16.mxu0 %v2144_v17 }
  0xbe   : > { %1330 = vmatmul.mubr.f32.gmra.mrb[10].mxu0 %v408_v53 }
  0xbf   : > { %1332 = vmatprep.mubr.f32.mxu0 %v409_v54 }
  0xc0   : > { %1537 = vmatpush3.bf16.msra.mxu0 %v2144_v17 }
  0xc2   : > { %1333 = vmatmul.mubr.f32.gmra.mrb[12].mxu0 %v410_v55 }
  0xc3   : > { %1335 = vmatprep.mubr.f32.mxu0 %v411_v56 }
  0xc6   : > { %1336 = vmatmul.mubr.f32.gmra.mrb[14].mxu0 %v412_v57 }
 0x17d   : > { %v1316_v19 = vpop.f32.mrb[0].mxu0 }
 0x17e   : > { %v582_v21 = vmul.f32 %v1316_v19, %v2152_v18  ;;  %v495_v22 = vpop.f32.mrb[1].mxu0 }
 0x17f   : > { %v581_v23 = vmul.f32 %v2152_v18, %v495_v22 }
 0x180   : > { %v605_v24 = vadd.f32 %v2157_v20, %v582_v21 }
 0x181   : > { %v1319_v25 = vpop.f32.mrb[2].mxu0  ;;  %v604_v26 = vadd.f32 %v2157_v20, %v581_v23  ;;  %v871_v23 = vld [vmem:[#allocation8 + $0x60] sm:$0xff] }
 0x182   : > { %v584_v27 = vmul.f32 %v1319_v25, %v2152_v18  ;;  %v505_v28 = vpop.f32.mrb[3].mxu0  ;;  %v621_v31 = vmax.f32 %v605_v24, 0.0  ;;  %v872_v24 = vld [vmem:[#allocation8 + $0x68] sm:$0xff] }
 0x183   : > { %v583_v29 = vmul.f32 %v2152_v18, %v505_v28  ;;  %v620_v30 = vmax.f32 %v604_v26, 0.0  ;;  %v1538_v25 = vpack.c.bf16 %v872_v24, %v871_v23  ;;  %v874_v26 = vld [vmem:[#allocation8 + $0x78] sm:$0xff]  ;;  %v2207_v28 = vld [vmem:[%s2321_s6] ss:$0 sm:$0xff] }
 0x184   : > { %v607_v32 = vadd.f32 %v2157_v20, %v584_v27 }
 0x185   : > { %v606_v33 = vadd.f32 %v2157_v20, %v583_v29  ;;  %v1322_v34 = vpop.f32.mrb[4].mxu0  ;;  %1370 = vmatprep.mubr.f32.mxu1 %v620_v30  ;;  %1539 = vmatprep.subr.bf16.mxu0 %v1538_v25 }
 0x186   : > { %v586_v35 = vmul.f32 %v1322_v34, %v2152_v18  ;;  %v515_v36 = vpop.f32.mrb[5].mxu0  ;;  %1371 = vmatmul.mubr.f32.vlgmr.msra.gmra.mrb[0].mxu1 %v621_v31  ;;  %v623_v39 = vmax.f32 %v607_v32, 0.0  ;;  %1541 = vmatpush3.bf16.msra.mxu0 %v1538_v25 }
 0x187   : > { %v622_v37 = vmax.f32 %v606_v33, 0.0  ;;  %v585_v38 = vmul.f32 %v2152_v18, %v515_v36  ;;  %1554 = vmatpush3.bf16.msra.mxu1 %v1514_v3 }
 0x188   : > { %v609_v40 = vadd.f32 %v2157_v20, %v586_v35  ;;  %1547 = vmatprep.subr.bf16.mxu1 %v1518_v5 }
 0x189   : > { %v608_v41 = vadd.f32 %v2157_v20, %v585_v38  ;;  %v1325_v42 = vpop.f32.mrb[6].mxu0  ;;  %1373 = vmatprep.mubr.f32.mxu1 %v622_v37 }
 0x18a   : > { %v588_v43 = vmul.f32 %v1325_v42, %v2152_v18  ;;  %v525_v44 = vpop.f32.mrb[7].mxu0  ;;  %1374 = vmatmul.mubr.f32.gmra.mrb[2].mxu1 %v623_v39  ;;  %v625_v47 = vmax.f32 %v609_v40, 0.0 }
 0x18b   : > { %v624_v45 = vmax.f32 %v608_v41, 0.0  ;;  %v587_v46 = vmul.f32 %v2152_v18, %v525_v44  ;;  %1555 = vmatpush3.bf16.msra.mxu1 %v1518_v5 }
 0x18c   : > { %v611_v48 = vadd.f32 %v2157_v20, %v588_v43  ;;  %1548 = vmatprep.subr.bf16.mxu1 %v2133_v8 }
 0x18d   : > { %v610_v49 = vadd.f32 %v2157_v20, %v587_v46  ;;  %v1328_v50 = vpop.f32.mrb[8].mxu0  ;;  %1376 = vmatprep.mubr.f32.mxu1 %v624_v45 }
 0x18e   : > { %v590_v51 = vmul.f32 %v1328_v50, %v2152_v18  ;;  %v535_v52 = vpop.f32.mrb[9].mxu0  ;;  %1377 = vmatmul.mubr.f32.gmra.mrb[4].mxu1 %v625_v47  ;;  %v627_v55 = vmax.f32 %v611_v48, 0.0 }
 0x18f   : > { %v626_v53 = vmax.f32 %v610_v49, 0.0  ;;  %v589_v54 = vmul.f32 %v2152_v18, %v535_v52  ;;  %1556 = vmatpush3.bf16.msra.mxu1 %v2133_v8 }
 0x190   : > { %v613_v56 = vadd.f32 %v2157_v20, %v590_v51  ;;  %1549 = vmatprep.subr.bf16.mxu1 %v2136_v11 }
 0x191   : > { %v612_v57 = vadd.f32 %v2157_v20, %v589_v54  ;;  %v1331_v58 = vpop.f32.mrb[10].mxu0  ;;  %1379 = vmatprep.mubr.f32.mxu1 %v626_v53 }
 0x192   : > { %v592_v59 = vmul.f32 %v1331_v58, %v2152_v18  ;;  %v545_v60 = vpop.f32.mrb[11].mxu0  ;;  %1380 = vmatmul.mubr.f32.gmra.mrb[6].mxu1 %v627_v55  ;;  %v629_v63 = vmax.f32 %v613_v56, 0.0 }
 0x193   : > { %v628_v61 = vmax.f32 %v612_v57, 0.0  ;;  %v591_v62 = vmul.f32 %v2152_v18, %v545_v60  ;;  %1557 = vmatpush3.bf16.msra.mxu1 %v2136_v11 }
 0x194   : > { %v615_v0 = vadd.f32 %v2157_v20, %v592_v59  ;;  %1550 = vmatprep.subr.bf16.mxu1 %v2140_v14 }
 0x195   : > { %v614_v1 = vadd.f32 %v2157_v20, %v591_v62  ;;  %v1334_v2 = vpop.f32.mrb[12].mxu0  ;;  %1382 = vmatprep.mubr.f32.mxu1 %v628_v61 }
 0x196   : > { %v594_v3 = vmul.f32 %v1334_v2, %v2152_v18  ;;  %v555_v4 = vpop.f32.mrb[13].mxu0  ;;  %1383 = vmatmul.mubr.f32.gmra.mrb[8].mxu1 %v629_v63  ;;  %v631_v7 = vmax.f32 %v615_v0, 0.0 }
 0x197   : > { %v630_v5 = vmax.f32 %v614_v1, 0.0  ;;  %v593_v6 = vmul.f32 %v2152_v18, %v555_v4  ;;  %1558 = vmatpush3.bf16.msra.mxu1 %v2140_v14 }
 0x198   : > { %v617_v8 = vadd.f32 %v2157_v20, %v594_v3  ;;  %1551 = vmatprep.subr.bf16.mxu1 %v2144_v17 }
 0x199   : > { %v616_v9 = vadd.f32 %v2157_v20, %v593_v6  ;;  %v1337_v10 = vpop.f32.mrb[14].mxu0  ;;  %1385 = vmatprep.mubr.f32.mxu1 %v630_v5 }
 0x19a   : > { %v596_v11 = vmul.f32 %v1337_v10, %v2152_v18  ;;  %v565_v12 = vpop.f32.mrb[15].mxu0  ;;  %1386 = vmatmul.mubr.f32.gmra.mrb[10].mxu1 %v631_v7  ;;  %v633_v16 = vmax.f32 %v617_v8, 0.0 }
 0x19b   : > { %v632_v13 = vmax.f32 %v616_v9, 0.0  ;;  %v595_v15 = vmul.f32 %v2152_v18, %v565_v12  ;;  %1559 = vmatpush3.bf16.msra.mxu1 %v2144_v17  ;;  %v873_v18 = vld [vmem:[#allocation8 + $0x70] sm:$0xff] }
 0x19c   : > { %v619_v14 = vadd.f32 %v2157_v20, %v596_v11  ;;  %1552 = vmatprep.subr.bf16.mxu1 %v1538_v25  ;;  %v1542_v17 = vpack.c.bf16 %v874_v26, %v873_v18 }
 0x19d   : > { %v618_v19 = vadd.f32 %v2157_v20, %v595_v15  ;;  %1388 = vmatprep.mubr.f32.mxu1 %v632_v13  ;;  %v2202_v20 = vld [vmem:[%s2320_s5] ss:$0 sm:$0xff] }
 0x19e   : > { %1389 = vmatmul.mubr.f32.gmra.mrb[12].mxu1 %v633_v16  ;;  %v635_v22 = vmax.f32 %v619_v14, 0.0  ;;  %1543 = vmatprep.subr.bf16.mxu0 %v1542_v17 }
 0x19f   : > { %v634_v21 = vmax.f32 %v618_v19, 0.0  ;;  %1560 = vmatpush3.bf16.msra.mxu1 %v1538_v25  ;;  %1545 = vmatpush3.bf16.msra.mxu0 %v1542_v17 }
 0x1a0   : > { %1553 = vmatprep.subr.bf16.mxu1 %v1542_v17 }
 0x1a1   : > { %1391 = vmatprep.mubr.f32.mxu1 %v634_v21 }
 0x1a2   : > { %1392 = vmatmul.mubr.f32.gmra.mrb[14].mxu1 %v635_v22 }
 0x1a3   : > { %1561 = vmatpush3.bf16.msra.mxu1 %v1542_v17 }
 0x259   : > { %v1372_v27 = vpop.f32.mrb[0].mxu1 }
 0x25a   : > { %v805_v29 = vmul.f32 %v1372_v27, %v2202_v20  ;;  %v718_v30 = vpop.f32.mrb[1].mxu1 }
 0x25b   : > { %v804_v31 = vmul.f32 %v2202_v20, %v718_v30  ;;  %v1178_v30 = vld [vmem:[%s2323_s8] ss:$0 sm:$0xff] }
 0x25c   : > { %v828_v32 = vadd.f32 %v2207_v28, %v805_v29 }
 0x25d   : > { %v827_v33 = vadd.f32 %v2207_v28, %v804_v31  ;;  %v1375_v34 = vpop.f32.mrb[2].mxu1 }
 0x25e   : > { %v807_v35 = vmul.f32 %v1375_v34, %v2202_v20  ;;  %v728_v36 = vpop.f32.mrb[3].mxu1  ;;  %v844_v39 = vmax.f32 %v828_v32, 0.0 }
 0x25f   : > { %v843_v37 = vmax.f32 %v827_v33, 0.0  ;;  %v806_v38 = vmul.f32 %v2202_v20, %v728_v36 }
 0x260   : > { %v830_v40 = vadd.f32 %v2207_v28, %v807_v35 }
 0x261   : > { %v829_v41 = vadd.f32 %v2207_v28, %v806_v38  ;;  %v1378_v42 = vpop.f32.mrb[4].mxu1  ;;  %1426 = vmatprep.mubr.f32.mxu0 %v843_v37 }
 0x262   : > { %v809_v43 = vmul.f32 %v1378_v42, %v2202_v20  ;;  %v738_v44 = vpop.f32.mrb[5].mxu1  ;;  %1427 = vmatmul.mubr.f32.vlgmr.msra.gmra.mrb[16].mxu0 %v844_v39  ;;  %v846_v47 = vmax.f32 %v830_v40, 0.0 }
 0x263   : > { %v845_v45 = vmax.f32 %v829_v41, 0.0  ;;  %v808_v46 = vmul.f32 %v2202_v20, %v738_v44 }
 0x264   : > { %v832_v48 = vadd.f32 %v2207_v28, %v809_v43 }
 0x265   : > { %v831_v49 = vadd.f32 %v2207_v28, %v808_v46  ;;  %v1381_v50 = vpop.f32.mrb[6].mxu1  ;;  %1429 = vmatprep.mubr.f32.mxu0 %v845_v45 }
 0x266   : > { %v811_v51 = vmul.f32 %v1381_v50, %v2202_v20  ;;  %v748_v52 = vpop.f32.mrb[7].mxu1  ;;  %1430 = vmatmul.mubr.f32.gmra.mrb[18].mxu0 %v846_v47  ;;  %v848_v55 = vmax.f32 %v832_v48, 0.0 }
 0x267   : > { %v847_v53 = vmax.f32 %v831_v49, 0.0  ;;  %v810_v54 = vmul.f32 %v2202_v20, %v748_v52 }
 0x268   : > { %v834_v56 = vadd.f32 %v2207_v28, %v811_v51 }
 0x269   : > { %v833_v57 = vadd.f32 %v2207_v28, %v810_v54  ;;  %v1384_v58 = vpop.f32.mrb[8].mxu1  ;;  %1432 = vmatprep.mubr.f32.mxu0 %v847_v53 }
 0x26a   : > { %v813_v59 = vmul.f32 %v1384_v58, %v2202_v20  ;;  %v758_v60 = vpop.f32.mrb[9].mxu1  ;;  %1433 = vmatmul.mubr.f32.gmra.mrb[20].mxu0 %v848_v55  ;;  %v850_v63 = vmax.f32 %v834_v56, 0.0 }
 0x26b   : > { %v849_v61 = vmax.f32 %v833_v57, 0.0  ;;  %v812_v62 = vmul.f32 %v2202_v20, %v758_v60 }
 0x26c   : > { %v836_v0 = vadd.f32 %v2207_v28, %v813_v59 }
 0x26d   : > { %v835_v1 = vadd.f32 %v2207_v28, %v812_v62  ;;  %v1387_v2 = vpop.f32.mrb[10].mxu1  ;;  %1435 = vmatprep.mubr.f32.mxu0 %v849_v61 }
 0x26e   : > { %v815_v3 = vmul.f32 %v1387_v2, %v2202_v20  ;;  %v768_v4 = vpop.f32.mrb[11].mxu1  ;;  %1436 = vmatmul.mubr.f32.gmra.mrb[22].mxu0 %v850_v63  ;;  %v852_v7 = vmax.f32 %v836_v0, 0.0 }
 0x26f   : > { %v851_v5 = vmax.f32 %v835_v1, 0.0  ;;  %v814_v6 = vmul.f32 %v2202_v20, %v768_v4 }
 0x270   : > { %v838_v8 = vadd.f32 %v2207_v28, %v815_v3 }
 0x271   : > { %v837_v9 = vadd.f32 %v2207_v28, %v814_v6  ;;  %v1390_v10 = vpop.f32.mrb[12].mxu1  ;;  %1438 = vmatprep.mubr.f32.mxu1 %v851_v5 }
 0x272   : > { %v817_v11 = vmul.f32 %v1390_v10, %v2202_v20  ;;  %v778_v12 = vpop.f32.mrb[13].mxu1  ;;  %1439 = vmatmul.mubr.f32.vlgmr.msra.gmra.mrb[16].mxu1 %v852_v7  ;;  %v854_v16 = vmax.f32 %v838_v8, 0.0 }
 0x273   : > { %v853_v13 = vmax.f32 %v837_v9, 0.0  ;;  %v816_v15 = vmul.f32 %v2202_v20, %v778_v12 }
 0x274   : > { %v840_v14 = vadd.f32 %v2207_v28, %v817_v11 }
 0x275   : > { %v839_v19 = vadd.f32 %v2207_v28, %v816_v15  ;;  %v1393_v21 = vpop.f32.mrb[14].mxu1  ;;  %1441 = vmatprep.mubr.f32.mxu1 %v853_v13 }
 0x276   : > { %v819_v22 = vmul.f32 %v1393_v21, %v2202_v20  ;;  %v788_v23 = vpop.f32.mrb[15].mxu1  ;;  %1442 = vmatmul.mubr.f32.gmra.mrb[18].mxu1 %v854_v16  ;;  %v856_v18 = vmax.f32 %v840_v14, 0.0 }
 0x277   : > { %v855_v24 = vmax.f32 %v839_v19, 0.0  ;;  %v818_v25 = vmul.f32 %v2202_v20, %v788_v23 }
 0x278   : > { %v842_v26 = vadd.f32 %v2207_v28, %v819_v22 }
 0x279   : > { %v841_v17 = vadd.f32 %v2207_v28, %v818_v25  ;;  %1444 = vmatprep.mubr.f32.mxu1 %v855_v24 }
 0x27a   : > { %1445 = vmatmul.mubr.f32.gmra.mrb[20].mxu1 %v856_v18  ;;  %v858_v29 = vmax.f32 %v842_v26, 0.0 }
 0x27b   : > { %v857_v27 = vmax.f32 %v841_v17, 0.0 }
 0x27d   : > { %1447 = vmatprep.mubr.f32.mxu1 %v857_v27 }
 0x27e   : > { %1448 = vmatmul.mubr.f32.gmra.mrb[22].mxu1 %v858_v29 }
 0x335   : > { %v1428_v31 = vpop.f32.mrb[16].mxu0 }
 0x336   : > { %v954_v32 = vadd.f32 %v1428_v31, %v1178_v30  ;;  %v948_v33 = vpop.f32.mrb[17].mxu0 }
 0x337   : > { %v949_v34 = vadd.f32 %v1178_v30, %v948_v33 }
 0x338   : > { %1028 = vst [vmem:[%s2246_s21 + $0x8] sm:$0xff] %v954_v32 }
 0x339   : > { %1027 = vst [vmem:[%s2246_s21] sm:$0xff] %v949_v34  ;;  %v1431_v20 = vpop.f32.mrb[18].mxu0 }
 0x33a   : > { %v964_v28 = vadd.f32 %v1431_v20, %v1178_v30  ;;  %v958_v35 = vpop.f32.mrb[19].mxu0 }
 0x33b   : > { %v959_v36 = vadd.f32 %v1178_v30, %v958_v35 }
 0x33c   : > { %1030 = vst [vmem:[%s2246_s21 + $0x18] sm:$0xff] %v964_v28 }
 0x33d   : > { %1029 = vst [vmem:[%s2246_s21 + $0x10] sm:$0xff] %v959_v36  ;;  %v1434_v37 = vpop.f32.mrb[20].mxu0 }
 0x33e   : > { %v974_v38 = vadd.f32 %v1434_v37, %v1178_v30  ;;  %v968_v39 = vpop.f32.mrb[21].mxu0 }
 0x33f   : > { %v969_v40 = vadd.f32 %v1178_v30, %v968_v39 }
 0x340   : > { %1032 = vst [vmem:[%s2246_s21 + $0x28] sm:$0xff] %v974_v38 }
 0x341   : > { %1031 = vst [vmem:[%s2246_s21 + $0x20] sm:$0xff] %v969_v40  ;;  %v1437_v41 = vpop.f32.mrb[22].mxu0 }
 0x342   : > { %v984_v42 = vadd.f32 %v1437_v41, %v1178_v30  ;;  %v978_v43 = vpop.f32.mrb[23].mxu0 }
 0x343   : > { %v979_v44 = vadd.f32 %v1178_v30, %v978_v43 }
 0x344   : > { %1034 = vst [vmem:[%s2246_s21 + $0x38] sm:$0xff] %v984_v42 }
 0x345   : > { %1033 = vst [vmem:[%s2246_s21 + $0x30] sm:$0xff] %v979_v44  ;;  %v1440_v45 = vpop.f32.mrb[16].mxu1 }
 0x346   : > { %v994_v46 = vadd.f32 %v1440_v45, %v1178_v30  ;;  %v988_v47 = vpop.f32.mrb[17].mxu1 }
 0x347   : > { %v989_v48 = vadd.f32 %v1178_v30, %v988_v47 }
 0x348   : > { %1036 = vst [vmem:[%s2246_s21 + $0x48] sm:$0xff] %v994_v46 }
 0x349   : > { %1035 = vst [vmem:[%s2246_s21 + $0x40] sm:$0xff] %v989_v48  ;;  %v1443_v49 = vpop.f32.mrb[18].mxu1 }
 0x34a   : > { %v1004_v50 = vadd.f32 %v1443_v49, %v1178_v30  ;;  %v998_v51 = vpop.f32.mrb[19].mxu1 }
 0x34b   : > { %v999_v52 = vadd.f32 %v1178_v30, %v998_v51 }
 0x34c   : > { %1038 = vst [vmem:[%s2246_s21 + $0x58] sm:$0xff] %v1004_v50 }
 0x34d   : > { %1037 = vst [vmem:[%s2246_s21 + $0x50] sm:$0xff] %v999_v52  ;;  %v1446_v53 = vpop.f32.mrb[20].mxu1 }
 0x34e   : > { %v1014_v54 = vadd.f32 %v1446_v53, %v1178_v30  ;;  %v1008_v55 = vpop.f32.mrb[21].mxu1 }
 0x34f   : > { %v1009_v56 = vadd.f32 %v1178_v30, %v1008_v55 }
 0x350   : > { %1040 = vst [vmem:[%s2246_s21 + $0x68] sm:$0xff] %v1014_v54 }
 0x351   : > { %1039 = vst [vmem:[%s2246_s21 + $0x60] sm:$0xff] %v1009_v56  ;;  %v1449_v57 = vpop.f32.mrb[22].mxu1 }
 0x352   : > { %v1024_v58 = vadd.f32 %v1449_v57, %v1178_v30  ;;  %v1018_v59 = vpop.f32.mrb[23].mxu1 }
 0x353   : > { %v1019_v60 = vadd.f32 %v1178_v30, %v1018_v59 }
 0x354   : > { %1042 = vst [vmem:[%s2246_s21 + $0x78] sm:$0xff] %v1024_v58 }
 0x355   : > { %1041 = vst [vmem:[%s2246_s21 + $0x70] sm:$0xff] %v1019_v60 }
 0x356   : > { %1770 = shalt.err (!%p1767_p4)
}
 0x357   : > { %s1771_s28 = scalar_lea.hbm %s2267_s25, 2048  ;;  %s1775_s21 = scalar_lea.hbm %s2348_s17, 4096 }
 0x358   : > { %p1772_p9 = scmp.ne.s32.totalorder %s2267_s25, %s1771_s28  ;;  %p1776_p8 = scmp.lt.u32.totalorder %s2267_s25, %s2348_s17 }
 0x359   : > { %p1777_p13 = scmp.lt.u32.totalorder %s1775_s21, %s1771_s28  ;;  %p1779_p10 = scmp.lt.u32.totalorder %s1771_s28, %s2267_s25 }
 0x35a   : > { %p1773_p0 = pnand %p1772_p9, %p2046_p5 }
 0x35b   : > { %p1778_p6 = por %p1777_p13, %p1776_p8 }
 0x35c   : > { %p1774_p11 = pneg %p1773_p0 }
 0x35d   : > { %p1780_p3 = por %p1779_p10, %p1778_p6 }
 0x35f   : > { %p1781_p7 = pnand %p1780_p3, %p1774_p11 }
 0x361   : > { %1784 = shalt.err (!%p1781_p7)
}
 0x362   : > { %s1840_s15 = smov 128   ;;  %s1841_s26 = smov 8  }
 0x363   : > { %1576 = dma.vmem_to_hbm [thread:$0]  (%p2046_p5), %s2269_s19, 2048, %s2267_s25, %s1044_s13, %s1840_s15, %s1840_s15, %s1841_s26  }
 0x364 PF: > { %s2349_s23 = sld [smem:[#allocation15_spill]]  ;;  %s2350_s22 = sld [smem:[#allocation16_spill]] }
 0x365   : > { %p2352_p1 = scmp.ge.s32.totalorder %s1831_s12, 2 }
 0x36a   : > { %s1072_s20 = sand.u32 1, %s2349_s23   ;;  %p2351_p12 = scmp.ne.s32.totalorder %s2350_s22, 0 }
 0x36b   : > { %s1073_s28 = scalar_lea.sflag [#allocation4], %s1072_s20 }
 0x36c   : > { %p1593_p2 = pnand %p2352_p1, %p2351_p12 }
 0x36e   : > { %1814 = dma.done.wait (!%p1593_p2), %s1073_s28, 2048  }
 0x36f   : > { %1816 = vsyncadd (!%p1593_p2), %s1073_s28, 4294965248  ;;  %p24_p4 = scmp.ge.s32.totalorder %s2032_s14, 4   ;;  %s2353_s30 = smov %s1823_s10 }
 0x370   : > { %s2354_s10 = smov %s1827_s11  ;;  %s2355_s11 = smov %s2042_s16 }
 0x371   : > { %s2356_s12 = smov %s2032_s14  ;;  %26 = sbr.rel (!%p24_p4) target bundleno = 9 (0x9), region = 113 }
 0x378   :  { %1078 = vsyncpa [#allocation3], 1 }
 0x379   :  { %1080 = vsyncpa [#allocation3 + $0x1], 1 }
 0x37a   :  { %1081 = vsyncpa [#allocation6], 1 }
 0x37b   :  { %1082 = vsyncpa [#allocation9], 1 }
 0x37c   :  { %1083 = vsyncpa [#allocation4], 1 }
 0x37d   :  { %1085 = vsyncpa [#allocation4 + $0x1], 1 }

</bundles_post_ra>
